<compile_context>
chip_gen: v7x
topology: tpu7x:2x2x1
jax: 0.10.0
libtpu: 0.0.40
codegen_flags: <defaults>
</compile_context>

<pallas_src>
import functools

import jax
import jax.numpy as jnp
from jax.experimental import pallas as pl
from jax.experimental.pallas import tpu as pltpu


# -----------------------------------------------------------------------------
# Pallas kernel: tiled (A@X)@W1 + ReLU + masked max-pool + Linear + log_softmax
# -----------------------------------------------------------------------------
def _gnn_kernel(a_ref, x_ref, w1_ref, b1_ref, bias_ref, w2_ref, b2_ref,
                out_ref, acc_ref, pooled_ref, *, num_graphs):
    i = pl.program_id(0)            # node-row tile
    k = pl.program_id(1)            # reduction tile (cols of A / rows of X)
    ni = pl.num_programs(0)
    nk = pl.num_programs(1)

    # Pooled-max accumulator lives across the whole grid; init on the first step.
    @pl.when((i == 0) & (k == 0))
    def _init_pooled():
        pooled_ref[...] = jnp.full_like(pooled_ref, -1e30)

    # (A @ X) accumulator for the current row tile; init at k == 0.
    @pl.when(k == 0)
    def _init_acc():
        acc_ref[...] = jnp.zeros_like(acc_ref)

    # Dominant contraction: bf16 MXU inputs, f32 accumulation, carries F columns.
    acc_ref[...] += jnp.dot(a_ref[...], x_ref[...],
                            preferred_element_type=jnp.float32)

    @pl.when(k == nk - 1)
    def _finish_row_tile():
        # (A@X) @ W1 + b1, ReLU  -> h: [tm, H] in f32
        h = jnp.dot(acc_ref[...], w1_ref[...],
                    preferred_element_type=jnp.float32)
        h = jnp.maximum(h + b1_ref[...], 0.0)

        # Masked max pool via additive bias column per graph (lane slice of [tm, G],
        # no sublane relayout). bias is 0 for member nodes, -1e30 otherwise; since
        # |h| << 1e30, h + (-1e30) == -1e30 exactly, so masked rows never win.
        bias = bias_ref[...]                                   # [tm, G]
        for g in range(num_graphs):                            # G is tiny & static
            row = jnp.max(h + bias[:, g:g + 1], axis=0, keepdims=True)   # [1, H]
            pooled_ref[g:g + 1, :] = jnp.maximum(pooled_ref[g:g + 1, :], row)

    # Final linear + log_softmax, written once on the last grid step.
    @pl.when((i == ni - 1) & (k == nk - 1))
    def _finalize():
        pooled = pooled_ref[...]                               # [G, H]
        logits = jnp.dot(pooled, w2_ref[...],
                         preferred_element_type=jnp.float32) + b2_ref[...]
        m = jnp.max(logits, axis=-1, keepdims=True)
        z = logits - m
        lse = jnp.log(jnp.sum(jnp.exp(z), axis=-1, keepdims=True))
        out_ref[...] = z - lse


def _round_up(x, m):
    return (x + m - 1) // m * m


def gnn_forward_pallas(a_norm, x, w1, b1, batch, num_graphs, w2, b2, *,
                       tm=256, tk=512):
    """a_norm: [N, N] f32, x: [N, F] f32, batch: [N] int32 graph ids in [0, G)."""
    n, f = x.shape
    h = w1.shape[1]
    c = w2.shape[1]

    # Tile hygiene: tk multiple of 128 (lane dim of A tile), tm multiple of 8,
    # and tm | tk so a single padded N satisfies both grid axes.
    tk = min(tk, _round_up(n, 128))
    tm = min(tm, tk)
    if tk % tm != 0:
        tm = 128
    assert tk % 128 == 0 and tm % 8 == 0 and tk % tm == 0

    n_pad = _round_up(n, tk)
    grid = (n_pad // tm, n_pad // tk)

    # bf16 MXU inputs for the N^2 contraction (halves A_norm DMA bytes too);
    # zero padding is harmless (padded A rows are masked out of the pool below).
    a_p = jnp.zeros((n_pad, n_pad), jnp.bfloat16).at[:n, :n].set(
        a_norm.astype(jnp.bfloat16))
    x_p = jnp.zeros((n_pad, f), jnp.bfloat16).at[:n, :].set(
        x.astype(jnp.bfloat16))

    # Additive pooling bias, [N_pad, G]: 0 if node belongs to graph g, else -1e30.
    member = batch[:, None] == jnp.arange(num_graphs, dtype=batch.dtype)[None, :]
    bias = jnp.where(member, 0.0, -1e30).astype(jnp.float32)
    bias = jnp.concatenate(
        [bias, jnp.full((n_pad - n, num_graphs), -1e30, jnp.float32)], axis=0)

    kernel = functools.partial(_gnn_kernel, num_graphs=num_graphs)

    return pl.pallas_call(
        kernel,
        out_shape=jax.ShapeDtypeStruct((num_graphs, c), jnp.float32),
        grid_spec=pltpu.PrefetchScalarGridSpec(
            num_scalar_prefetch=0,
            grid=grid,
            in_specs=[
                pl.BlockSpec((tm, tk), lambda i, k: (i, k)),          # A_norm tile
                pl.BlockSpec((tk, f), lambda i, k: (k, 0)),           # X tile
                pl.BlockSpec((f, h), lambda i, k: (0, 0)),            # W1
                pl.BlockSpec((1, h), lambda i, k: (0, 0)),            # b1
                pl.BlockSpec((tm, num_graphs), lambda i, k: (i, 0)),  # pool bias
                pl.BlockSpec((h, c), lambda i, k: (0, 0)),            # W2
                pl.BlockSpec((1, c), lambda i, k: (0, 0)),            # b2
            ],
            out_specs=pl.BlockSpec((num_graphs, c), lambda i, k: (0, 0)),
            scratch_shapes=[
                pltpu.VMEM((tm, f), jnp.float32),            # (A@X) accumulator
                pltpu.VMEM((num_graphs, h), jnp.float32),    # pooled-max accumulator
            ],
        ),
        compiler_params=pltpu.CompilerParams(
            # Both axes carry state (K-reduction accumulator; pooled max across
            # row tiles; output written once at the end) -> "arbitrary".
            dimension_semantics=("arbitrary", "arbitrary")),
    )(a_p, x_p, w1, b1.reshape(1, -1), bias, w2, b2.reshape(1, -1))


# -----------------------------------------------------------------------------
# Glue: symmetric-normalized adjacency (GCNConv semantics) from edge_index
# -----------------------------------------------------------------------------
def gcn_norm_adj(edge_index, num_nodes):
    src = edge_index[0]
    dst = edge_index[1]
    a = jnp.zeros((num_nodes, num_nodes), jnp.float32).at[dst, src].set(1.0)
    a = a + jnp.eye(num_nodes, dtype=jnp.float32)            # add self loops
    deg = jnp.sum(a, axis=1)
    dinv = 1.0 / jnp.sqrt(deg)                               # deg >= 1 (self loops)
    return dinv[:, None] * a * dinv[None, :]


# Pure-JAX reference (same bf16 cast on the big contraction for parity checking)
def reference_forward(a_norm, x, w1, b1, batch, num_graphs, w2, b2):
    ax = jnp.dot(a_norm.astype(jnp.bfloat16), x.astype(jnp.bfloat16),
                 preferred_element_type=jnp.float32)
    hp = jnp.maximum(
        jnp.dot(ax, w1, precision=jax.lax.Precision.HIGHEST) + b1, 0.0)
    mask = batch[None, :] == jnp.arange(num_graphs)[:, None]
    pooled = jnp.max(jnp.where(mask[:, :, None], hp[None, :, :], -1e30), axis=1)
    logits = jnp.dot(pooled, w2, precision=jax.lax.Precision.HIGHEST) + b2
    return jax.nn.log_softmax(logits, axis=-1)


if __name__ == "__main__":
    # Small, module-consistent shapes (args.num_features=16, args.nhid=32, 2 classes)
    num_nodes = 200          # total nodes across the batch of graphs
    num_features = 16
    nhid = 32
    num_classes = 2
    num_graphs = 2           # batch of 2 graphs, 100 nodes each
    num_edges = 600

    key = jax.random.PRNGKey(0)
    k_x, k_e, k_w1, k_b1, k_w2, k_b2 = jax.random.split(key, 6)

    x = jax.random.normal(k_x, (num_nodes, num_features), jnp.float32)
    edge_index = jax.random.randint(k_e, (2, num_edges), 0, num_nodes, dtype=jnp.int32)
    batch = jnp.concatenate([
        jnp.zeros(num_nodes // 2, jnp.int32),
        jnp.ones(num_nodes - num_nodes // 2, jnp.int32),
    ])

    # Deterministic parameter init (GCNConv weight/bias, lin2 weight/bias)
    w1 = jax.random.normal(k_w1, (num_features, nhid), jnp.float32) * 0.1
    b1 = jax.random.normal(k_b1, (nhid,), jnp.float32) * 0.1
    w2 = jax.random.normal(k_w2, (nhid, num_classes), jnp.float32) * 0.1
    b2 = jax.random.normal(k_b2, (num_classes,), jnp.float32) * 0.1

    a_norm = gcn_norm_adj(edge_index, num_nodes)

    # Small tiles so the (row-tile, K-tile) grid is actually exercised at this size:
    # n_pad = 256 -> grid (4, 2). Production default tm=256/tk=512 stays VMEM-safe on v7x.
    out = gnn_forward_pallas(a_norm, x, w1, b1, batch, num_graphs, w2, b2,
                             tm=64, tk=128)
    out = jax.block_until_ready(out)

    ref = reference_forward(a_norm, x, w1, b1, batch, num_graphs, w2, b2)
    assert out.shape == (num_graphs, num_classes)
    assert jnp.allclose(out, ref, atol=5e-3, rtol=5e-3), (out, ref)

    print("KERNEL_OK")
</pallas_src>

<mosaic_0001>
module attributes {stable_mosaic.version = 11 : i64} {
  func.func @_gnn_kernel(%arg0: i32, %arg1: i32, %arg2: memref<64x128xbf16, #tpu.memory_space<vmem>>, %arg3: memref<128x16xbf16, #tpu.memory_space<vmem>>, %arg4: memref<16x32xf32, #tpu.memory_space<vmem>>, %arg5: memref<1x32xf32, #tpu.memory_space<vmem>>, %arg6: memref<64x2xf32, #tpu.memory_space<vmem>>, %arg7: memref<32x2xf32, #tpu.memory_space<vmem>>, %arg8: memref<1x2xf32, #tpu.memory_space<vmem>>, %arg9: memref<2x2xf32, #tpu.memory_space<vmem>>, %arg10: memref<64x16xf32, #tpu.memory_space<vmem>>, %arg11: memref<2x32xf32, #tpu.memory_space<vmem>>) attributes {dimension_semantics = [#tpu.dimension_semantics<arbitrary>, #tpu.dimension_semantics<arbitrary>], iteration_bounds = array<i64: 4, 2>, scalar_prefetch = 0 : i64, scratch_operands = 2 : i64, tpu.core_type = #tpu.core_type<tc>, window_params = [{transform_indices = @transform_0, window_bounds = array<i64: 64, 128>}, {transform_indices = @transform_1, window_bounds = array<i64: 128, 16>}, {pipeline_mode = #tpu.pipeline_mode<synchronous>, transform_indices = @transform_2, window_bounds = array<i64: 16, 32>}, {pipeline_mode = #tpu.pipeline_mode<synchronous>, transform_indices = @transform_3, window_bounds = array<i64: 1, 32>}, {transform_indices = @transform_4, window_bounds = array<i64: 64, 2>}, {pipeline_mode = #tpu.pipeline_mode<synchronous>, transform_indices = @transform_5, window_bounds = array<i64: 32, 2>}, {pipeline_mode = #tpu.pipeline_mode<synchronous>, transform_indices = @transform_6, window_bounds = array<i64: 1, 2>}, {pipeline_mode = #tpu.pipeline_mode<synchronous>, transform_indices = @transform_7, window_bounds = array<i64: 2, 2>}]} {
    %c0_i32 = arith.constant 0 : i32
    %0 = arith.cmpi eq, %arg0, %c0_i32 : i32
    %c0_i32_0 = arith.constant 0 : i32
    %1 = arith.cmpi eq, %arg1, %c0_i32_0 : i32
    %2 = arith.andi %0, %1 : i1
    %3 = arith.extui %2 : i1 to i32
    %c0_i32_1 = arith.constant 0 : i32
    %4 = arith.cmpi ne, %3, %c0_i32_1 : i32
    scf.if %4 {
      %cst_14 = arith.constant -1.000000e+30 : f32
      %22 = vector.broadcast %cst_14 : f32 to vector<2x32xf32>
      %c0_15 = arith.constant 0 : index
      %c0_16 = arith.constant 0 : index
      %23 = vector.load %arg11[%c0_15, %c0_16] : memref<2x32xf32, #tpu.memory_space<vmem>>, vector<2x32xf32>
      tpu.vector_store %arg11[%c0_15, %c0_16], %22 {strides = array<i32>} : memref<2x32xf32, #tpu.memory_space<vmem>>, vector<2x32xf32>,
    } else {
    }
    %c0_i32_2 = arith.constant 0 : i32
    %5 = arith.cmpi eq, %arg1, %c0_i32_2 : i32
    %6 = arith.extui %5 : i1 to i32
    %c0_i32_3 = arith.constant 0 : i32
    %7 = arith.cmpi ne, %6, %c0_i32_3 : i32
    scf.if %7 {
      %cst_14 = arith.constant 0.000000e+00 : f32
      %22 = vector.broadcast %cst_14 : f32 to vector<64x16xf32>
      %c0_15 = arith.constant 0 : index
      %c0_16 = arith.constant 0 : index
      %23 = vector.load %arg10[%c0_15, %c0_16] : memref<64x16xf32, #tpu.memory_space<vmem>>, vector<64x16xf32>
      tpu.vector_store %arg10[%c0_15, %c0_16], %22 {strides = array<i32>} : memref<64x16xf32, #tpu.memory_space<vmem>>, vector<64x16xf32>,
    } else {
    }
    %c0 = arith.constant 0 : index
    %c0_4 = arith.constant 0 : index
    %8 = vector.load %arg10[%c0, %c0_4] : memref<64x16xf32, #tpu.memory_space<vmem>>, vector<64x16xf32>
    %c0_5 = arith.constant 0 : index
    %c0_6 = arith.constant 0 : index
    %9 = vector.load %arg2[%c0_5, %c0_6] : memref<64x128xbf16, #tpu.memory_space<vmem>>, vector<64x128xbf16>
    %c0_7 = arith.constant 0 : index
    %c0_8 = arith.constant 0 : index
    %10 = vector.load %arg3[%c0_7, %c0_8] : memref<128x16xbf16, #tpu.memory_space<vmem>>, vector<128x16xbf16>
    %cst = arith.constant dense<0.000000e+00> : vector<64x16xf32>
    %11 = tpu.matmul %9, %10, %cst {dimension_numbers = #tpu.dot_dimension_numbers<[1], [0], [0], [1], [0, 0, 1, 1], [], []>} : vector<64x128xbf16>, vector<128x16xbf16>, vector<64x16xf32> -> vector<64x16xf32>
    %12 = arith.addf %8, %11 : vector<64x16xf32>
    %c0_9 = arith.constant 0 : index
    %c0_10 = arith.constant 0 : index
    %13 = vector.load %arg10[%c0_9, %c0_10] : memref<64x16xf32, #tpu.memory_space<vmem>>, vector<64x16xf32>
    tpu.vector_store %arg10[%c0_9, %c0_10], %12 {strides = array<i32>} : memref<64x16xf32, #tpu.memory_space<vmem>>, vector<64x16xf32>,
    %c1_i32 = arith.constant 1 : i32
    %14 = arith.cmpi eq, %arg1, %c1_i32 : i32
    %15 = arith.extui %14 : i1 to i32
    %c0_i32_11 = arith.constant 0 : i32
    %16 = arith.cmpi ne, %15, %c0_i32_11 : i32
    scf.if %16 {
      %c0_14 = arith.constant 0 : index
      %c0_15 = arith.constant 0 : index
      %22 = vector.load %arg10[%c0_14, %c0_15] : memref<64x16xf32, #tpu.memory_space<vmem>>, vector<64x16xf32>
      %c0_16 = arith.constant 0 : index
      %c0_17 = arith.constant 0 : index
      %23 = vector.load %arg4[%c0_16, %c0_17] : memref<16x32xf32, #tpu.memory_space<vmem>>, vector<16x32xf32>
      %cst_18 = arith.constant dense<0.000000e+00> : vector<64x32xf32>
      %24 = tpu.matmul %22, %23, %cst_18 {dimension_numbers = #tpu.dot_dimension_numbers<[1], [0], [0], [1], [0, 0, 1, 1], [], []>} : vector<64x16xf32>, vector<16x32xf32>, vector<64x32xf32> -> vector<64x32xf32>
      %c0_19 = arith.constant 0 : index
      %c0_20 = arith.constant 0 : index
      %25 = vector.load %arg5[%c0_19, %c0_20] : memref<1x32xf32, #tpu.memory_space<vmem>>, vector<1x32xf32>
      %26 = vector.broadcast %25 : vector<1x32xf32> to vector<64x32xf32>
      %27 = arith.addf %24, %26 : vector<64x32xf32>
      %cst_21 = arith.constant 0.000000e+00 : f32
      %28 = vector.broadcast %cst_21 : f32 to vector<64x32xf32>
      %29 = arith.maximumf %27, %28 : vector<64x32xf32>
      %c0_22 = arith.constant 0 : index
      %c0_23 = arith.constant 0 : index
      %30 = vector.load %arg6[%c0_22, %c0_23] : memref<64x2xf32, #tpu.memory_space<vmem>>, vector<64x2xf32>
      %31 = vector.extract_strided_slice %30 {offsets = [0, 0], sizes = [64, 1], strides = [1, 1]} : vector<64x2xf32> to vector<64x1xf32>
      %32 = vector.broadcast %31 : vector<64x1xf32> to vector<64x32xf32>
      %33 = arith.addf %29, %32 : vector<64x32xf32>
      %cst_24 = arith.constant dense<0xFF800000> : vector<32xf32>
      %34 = vector.multi_reduction <maximumf>, %33, %cst_24 [0] : vector<64x32xf32> to vector<32xf32>
      %35 = vector.shape_cast %34 : vector<32xf32> to vector<1x32xf32>
      %c0_25 = arith.constant 0 : index
      %c0_26 = arith.constant 0 : index
      %36 = vector.load %arg11[%c0_25, %c0_26] : memref<2x32xf32, #tpu.memory_space<vmem>>, vector<1x32xf32>
      %37 = arith.maximumf %36, %35 : vector<1x32xf32>
      %c0_27 = arith.constant 0 : index
      %c0_28 = arith.constant 0 : index
      %38 = vector.load %arg11[%c0_27, %c0_28] : memref<2x32xf32, #tpu.memory_space<vmem>>, vector<1x32xf32>
      tpu.vector_store %arg11[%c0_27, %c0_28], %37 {strides = array<i32>} : memref<2x32xf32, #tpu.memory_space<vmem>>, vector<1x32xf32>,
      %39 = vector.extract_strided_slice %30 {offsets = [0, 1], sizes = [64, 1], strides = [1, 1]} : vector<64x2xf32> to vector<64x1xf32>
      %40 = vector.broadcast %39 : vector<64x1xf32> to vector<64x32xf32>
      %41 = arith.addf %29, %40 : vector<64x32xf32>
      %cst_29 = arith.constant dense<0xFF800000> : vector<32xf32>
      %42 = vector.multi_reduction <maximumf>, %41, %cst_29 [0] : vector<64x32xf32> to vector<32xf32>
      %43 = vector.shape_cast %42 : vector<32xf32> to vector<1x32xf32>
      %c1 = arith.constant 1 : index
      %c0_30 = arith.constant 0 : index
      %44 = vector.load %arg11[%c1, %c0_30] : memref<2x32xf32, #tpu.memory_space<vmem>>, vector<1x32xf32>
      %45 = arith.maximumf %44, %43 : vector<1x32xf32>
      %c1_31 = arith.constant 1 : index
      %c0_32 = arith.constant 0 : index
      %46 = vector.load %arg11[%c1_31, %c0_32] : memref<2x32xf32, #tpu.memory_space<vmem>>, vector<1x32xf32>
      tpu.vector_store %arg11[%c1_31, %c0_32], %45 {strides = array<i32>} : memref<2x32xf32, #tpu.memory_space<vmem>>, vector<1x32xf32>,
    } else {
    }
    %c3_i32 = arith.constant 3 : i32
    %17 = arith.cmpi eq, %arg0, %c3_i32 : i32
    %c1_i32_12 = arith.constant 1 : i32
    %18 = arith.cmpi eq, %arg1, %c1_i32_12 : i32
    %19 = arith.andi %17, %18 : i1
    %20 = arith.extui %19 : i1 to i32
    %c0_i32_13 = arith.constant 0 : i32
    %21 = arith.cmpi ne, %20, %c0_i32_13 : i32
    scf.if %21 {
      %c0_14 = arith.constant 0 : index
      %c0_15 = arith.constant 0 : index
      %22 = vector.load %arg11[%c0_14, %c0_15] : memref<2x32xf32, #tpu.memory_space<vmem>>, vector<2x32xf32>
      %c0_16 = arith.constant 0 : index
      %c0_17 = arith.constant 0 : index
      %23 = vector.load %arg7[%c0_16, %c0_17] : memref<32x2xf32, #tpu.memory_space<vmem>>, vector<32x2xf32>
      %cst_18 = arith.constant dense<0.000000e+00> : vector<2x2xf32>
      %24 = tpu.matmul %22, %23, %cst_18 {dimension_numbers = #tpu.dot_dimension_numbers<[1], [0], [0], [1], [0, 0, 1, 1], [], []>} : vector<2x32xf32>, vector<32x2xf32>, vector<2x2xf32> -> vector<2x2xf32>
      %c0_19 = arith.constant 0 : index
      %c0_20 = arith.constant 0 : index
      %25 = vector.load %arg8[%c0_19, %c0_20] : memref<1x2xf32, #tpu.memory_space<vmem>>, vector<1x2xf32>
      %26 = vector.broadcast %25 : vector<1x2xf32> to vector<2x2xf32>
      %27 = arith.addf %24, %26 : vector<2x2xf32>
      %cst_21 = arith.constant dense<0xFF800000> : vector<2xf32>
      %28 = vector.multi_reduction <maximumf>, %27, %cst_21 [1] : vector<2x2xf32> to vector<2xf32>
      %29 = vector.shape_cast %28 : vector<2xf32> to vector<2x1xf32>
      %30 = vector.broadcast %29 : vector<2x1xf32> to vector<2x2xf32>
      %31 = arith.subf %27, %30 : vector<2x2xf32>
      %32 = math.exp %31 : vector<2x2xf32>
      %cst_22 = arith.constant dense<0.000000e+00> : vector<2xf32>
      %33 = vector.multi_reduction <add>, %32, %cst_22 [1] : vector<2x2xf32> to vector<2xf32>
      %34 = vector.shape_cast %33 : vector<2xf32> to vector<2x1xf32>
      %35 = math.log %34 : vector<2x1xf32>
      %36 = vector.broadcast %35 : vector<2x1xf32> to vector<2x2xf32>
      %37 = arith.subf %31, %36 : vector<2x2xf32>
      %c0_23 = arith.constant 0 : index
      %c0_24 = arith.constant 0 : index
      %38 = vector.load %arg9[%c0_23, %c0_24] : memref<2x2xf32, #tpu.memory_space<vmem>>, vector<2x2xf32>
      tpu.vector_store %arg9[%c0_23, %c0_24], %37 {strides = array<i32>} : memref<2x2xf32, #tpu.memory_space<vmem>>, vector<2x2xf32>,
    } else {
    }
    return
  }
  func.func @transform_0(%arg0: i32, %arg1: i32) -> (i32, i32) {
    %c0_i32 = arith.constant 0 : i32
    return %arg0, %arg1 : i32, i32
  }
  func.func @transform_1(%arg0: i32, %arg1: i32) -> (i32, i32) {
    %c0_i32 = arith.constant 0 : i32
    %c0_i32_0 = arith.constant 0 : i32
    return %arg1, %c0_i32 : i32, i32
  }
  func.func @transform_2(%arg0: i32, %arg1: i32) -> (i32, i32) {
    %c0_i32 = arith.constant 0 : i32
    %c0_i32_0 = arith.constant 0 : i32
    %c0_i32_1 = arith.constant 0 : i32
    return %c0_i32, %c0_i32_0 : i32, i32
  }
  func.func @transform_3(%arg0: i32, %arg1: i32) -> (i32, i32) {
    %c0_i32 = arith.constant 0 : i32
    %c0_i32_0 = arith.constant 0 : i32
    %c0_i32_1 = arith.constant 0 : i32
    return %c0_i32, %c0_i32_0 : i32, i32
  }
  func.func @transform_4(%arg0: i32, %arg1: i32) -> (i32, i32) {
    %c0_i32 = arith.constant 0 : i32
    %c0_i32_0 = arith.constant 0 : i32
    return %arg0, %c0_i32 : i32, i32
  }
  func.func @transform_5(%arg0: i32, %arg1: i32) -> (i32, i32) {
    %c0_i32 = arith.constant 0 : i32
    %c0_i32_0 = arith.constant 0 : i32
    %c0_i32_1 = arith.constant 0 : i32
    return %c0_i32, %c0_i32_0 : i32, i32
  }
  func.func @transform_6(%arg0: i32, %arg1: i32) -> (i32, i32) {
    %c0_i32 = arith.constant 0 : i32
    %c0_i32_0 = arith.constant 0 : i32
    %c0_i32_1 = arith.constant 0 : i32
    return %c0_i32, %c0_i32_0 : i32, i32
  }
  func.func @transform_7(%arg0: i32, %arg1: i32) -> (i32, i32) {
    %c0_i32 = arith.constant 0 : i32
    %c0_i32_0 = arith.constant 0 : i32
    %c0_i32_1 = arith.constant 0 : i32
    return %c0_i32, %c0_i32_0 : i32, i32
  }
}

</mosaic_0001>

<bundles_post_ra>
// kernel: tpu_custom_call.1
= control target key start
LH: loop header
LB: loop body
LE: loop exit
PB: predicated region body
PF: predicated region fallthrough
CT: control target
= control target key end

     0   :  { %12 = vsyncpa [#allocation6], 0  ;;  %s1475_s24 = smov 0   ;;  %s1477_s25 = smov 0   ;;  %s1695_s0 = inlined_call_operand.vmem [shape: bf16[256,256], index: 0, kind: input, shape index: {}]   ;;  %s1696_s1 = inlined_call_operand.vmem [shape: bf16[256,16], index: 1, kind: input, shape index: {}]   ;;  %s1697_s2 = inlined_call_operand.vmem [shape: f32[16,32], index: 2, kind: input, shape index: {}]   ;;  %s1698_s3 = inlined_call_operand.vmem [shape: f32[1,32], index: 3, kind: input, shape index: {}]   ;;  %s1699_s4 = inlined_call_operand.vmem [shape: f32[256,2], index: 4, kind: input, shape index: {}]   ;;  %s1700_s5 = inlined_call_operand.vmem [shape: f32[32,2], index: 5, kind: input, shape index: {}]   ;;  %s1701_s6 = inlined_call_operand.vmem [shape: f32[1,2], index: 6, kind: input, shape index: {}]   ;;  %s1702_s7 = inlined_call_operand.hbm [shape: f32[2,2], index: 7, kind: output, shape index: {}]  }
   0x1   :  { %s1479_s26 = smov 0   ;;  %s1481_s27 = smov 0  }
   0x2   :  { %s1483_s28 = smov 0   ;;  %s1485_s29 = smov 0  }
   0x3   :  { %s1487_s30 = smov 0  }
   0x4 LB: > { %s1102_s8 = sadd.s32 4294967295, %s1425_s30   ;;  %s27_s9 = sadd.s32 1, %s1417_s28  ;;  %s1425_s30 = sphi %s1487_s30, %s18_s30   ;;  %s1421_s29 = sphi %s1485_s29, %s1709_s29   ;;  %s1417_s28 = sphi %s1483_s28, %s1708_s28   ;;  %s1413_s27 = sphi %s1481_s27, %s1707_s27   ;;  %s1409_s26 = sphi %s1479_s26, %s1706_s26   ;;  %s1405_s25 = sphi %s1477_s25, %s1705_s25   ;;  %s1401_s24 = sphi %s1475_s24, %s1704_s24  }
   0x5   : > { %p28_p0 = scmp.ge.s32.totalorder %s27_s9, 2  ;;  %s30_s10 = sadd.s32 1, %s1421_s29 }
   0x6   : > { %p46_p1 = scmp.ne.s32.totalorder %s1405_s25, %s1401_s24  ;;  %p47_p2 = scmp.eq.s32.totalorder %s1425_s30, 0 }
   0x7   : > { %s1711_s9 = smov (%p28_p0, %s27_s9), 0  ;;  %s1713_s10 = smov (!%p28_p0, %s30_s10), %s1421_s29 }
   0x8   : > { %p32_p3 = scmp.ge.s32.totalorder %s1713_s10, 4  ;;  %s35_s11 = ssub.s32 %s1417_s28, %s1711_s9 }
   0x9   : > { %p48_p4 = por %p47_p2, %p46_p1  ;;  %s39_s14 = sadd.s32 1, %s1405_s25 }
   0xa   : > { %s1715_s10 = smov (%p32_p3, %s1713_s10), 0  ;;  %p1104_p6 = scmp.ge.s32.totalorder %s1425_s30, 8 }
   0xb   : > { %s34_s12 = ssub.s32 %s1421_s29, %s1715_s10 }
   0xc   : > { %s36_s13 = sor.u32 %s35_s11, %s34_s12  ;;  %241 = sbr.rel (%p1104_p6) target bundleno = 30 (0x1e), region = 32 }
   0xd   : > { %p37_p5 = scmp.eq.s32.totalorder %s36_s13, 0 }
   0xf   : > { %s1527_s15 = scalar_select %p37_p5, %s1405_s25, %s39_s14  }
  0x13   : > { %244 = sbr.rel (!%p48_p4) target bundleno = 30 (0x1e), region = 36  ;;  %s246_s16 = sand.u32 (%p48_p4), 1, %s1405_s25  }
  0x14   : > { %s1144_s17 = sshll.u32 (%p48_p4), %s1421_s29, 4  ;;  %s1105_s18 = sshll.u32 (%p48_p4), %s246_s16, 5 }
  0x15   : > { %s251_s19 = sadd.s32 (%p48_p4), %s1417_s28, %s1144_s17  ;;  %s248_s11 = scalar_lea.vmem (%p48_p4), [#allocation4], %s1105_s18 }
  0x16   : > { %s1108_s20 = sshll.u32 (%p48_p4), %s251_s19, 2 }
  0x17   : > { %s253_s23 = scalar_lea.vmem (%p48_p4), %s1695_s0, %s1108_s20 }
  0x18   : > { %v269_v0 = vld [vmem:[%s253_s23] sm:$0xf] (%p48_p4)  ;;  %v271_v1 = vld [vmem:[%s253_s23 + $0x8] sm:$0xf] (%p48_p4)  ;;  %v273_v2 = vld [vmem:[%s253_s23 + $0x10] sm:$0xf] (%p48_p4) }
  0x19   : > { %270 = vst [vmem:[%s248_s11] sm:$0xf] (%p48_p4), %v269_v0  ;;  %272 = vst [vmem:[%s248_s11 + $0x4] sm:$0xf] (%p48_p4), %v271_v1  ;;  %v275_v3 = vld [vmem:[%s253_s23 + $0x18] sm:$0xf] (%p48_p4) }
  0x1a   : > { %274 = vst [vmem:[%s248_s11 + $0x8] sm:$0xf] %v273_v2  ;;  %v277_v4 = vld [vmem:[%s253_s23 + $0x20] sm:$0xf]  ;;  %v279_v5 = vld [vmem:[%s253_s23 + $0x28] sm:$0xf] }
  0x1b   : > { %276 = vst [vmem:[%s248_s11 + $0xc] sm:$0xf] %v275_v3  ;;  %278 = vst [vmem:[%s248_s11 + $0x10] sm:$0xf] %v277_v4  ;;  %v281_v6 = vld [vmem:[%s253_s23 + $0x30] sm:$0xf] }
  0x1c   : > { %280 = vst [vmem:[%s248_s11 + $0x14] sm:$0xf] %v279_v5  ;;  %v283_v7 = vld [vmem:[%s253_s23 + $0x38] sm:$0xf]  ;;  %282 = vst [vmem:[%s248_s11 + $0x18] sm:$0xf] %v281_v6 }
  0x1d   : > { %284 = vst [vmem:[%s248_s11 + $0x1c] sm:$0xf] %v283_v7 }
  0x1e PF: > { %p1109_p7 = scmp.ge.s32.totalorder %s1425_s30, 1  ;;  %p340_p8 = scmp.lt.s32.totalorder %s1425_s30, 9 }
  0x20   : > { %p341_p9 = pnand %p1109_p7, %p340_p8 }
  0x21   : > { %s347_s12 = sand.u32 (!%p341_p9), 1, %s1401_s24   ;;  %s1111_s13 = sshll.u32 (!%p341_p9), %s1409_s26, 4 }
  0x22   : > { %344 = sbr.rel (%p341_p9) target bundleno = 1137 (0x471), region = 85  ;;  %s1110_s14 = sshll.u32 (!%p341_p9), %s347_s12, 5 }
  0x23   : > { %p385_p10 = scmp.lt.s32.totalorder (!%p341_p9), %s1111_s13, 31  ;;  %s1113_s16 = sshll.u32 (!%p341_p9), %s1413_s27, 3 }
  0x24   : > { %p391_p11 = scmp.lt.s32.totalorder (!%p341_p9), %s1113_s16, 31  ;;  %p397_p12 = scmp.eq.s32.totalorder (!%p341_p9), %s1413_s27, 0 }
  0x25   : > { %p398_p13 = scmp.eq.s32.totalorder (!%p341_p9), %s1409_s26, 0  ;;  %s1553_s11 = scalar_lea.vmem (!%p341_p9), [#allocation4], %s1110_s14 }
  0x27   : > { %p399_p0 = pnand (!%p341_p9), %p398_p13, %p397_p12 }
  0x29   : > { %s1717_s13 = smov (!%p385_p10, %s1111_s13), 31  ;;  %s1719_s16 = smov (!%p391_p11, %s1113_s16), 31 }
  0x2a   : > { %s1112_s17 = sshll.u32 %s1717_s13, 2  ;;  %s1114_s21 = sshll.u32 %s1719_s16, 3  ;;  %vm403_vm0 = vcmask (!%p399_p0), 254976   ;;  %v1427_v8 = vmov (!%p399_p0), -1e+30  }
  0x2b   : > { %s1546_s20 = scalar_lea.vmem %s1696_s1, %s1112_s17  ;;  %s1551_s24 = scalar_lea.vmem %s1699_s4, %s1114_s21  ;;  %404 = vst.msk [vmem:[#allocation3] sm:$0x3] (!%p399_p0), %vm403_vm0, %v1427_v8 }
  0x2c   : > { %402 = sbr.rel (%p399_p0) target bundleno = 51 (0x33), region = 93 }
  0x33 PF: > { %p1115_p1 = scmp.ne.s32.totalorder %s1409_s26, 0 }
  0x34   : > { %vm408_vm1 = vcmask (!%p1115_p1), 130048   ;;  %v1428_v9 = vmov (!%p1115_p1), 0.0  }
  0x35   : > { %407 = sbr.rel (%p1115_p1) target bundleno = 60 (0x3c), region = 97  ;;  %409 = vst.msk [vmem:[#allocation2] sm:$0xff] (!%p1115_p1), %vm408_vm1, %v1428_v9  ;;  %410 = vst.msk [vmem:[#allocation2 + $0x8] sm:$0xff] (!%p1115_p1), %vm408_vm1, %v1428_v9 }
  0x36   : > { %411 = vst.msk [vmem:[#allocation2 + $0x10] sm:$0xff] (!%p1115_p1), %vm408_vm1, %v1428_v9  ;;  %412 = vst.msk [vmem:[#allocation2 + $0x18] sm:$0xff] (!%p1115_p1), %vm408_vm1, %v1428_v9 }
  0x37   : > { %413 = vst.msk [vmem:[#allocation2 + $0x20] sm:$0xff] (!%p1115_p1), %vm408_vm1, %v1428_v9  ;;  %414 = vst.msk [vmem:[#allocation2 + $0x28] sm:$0xff] (!%p1115_p1), %vm408_vm1, %v1428_v9 }
  0x38   : > { %415 = vst.msk [vmem:[#allocation2 + $0x30] sm:$0xff] (!%p1115_p1), %vm408_vm1, %v1428_v9  ;;  %416 = vst.msk [vmem:[#allocation2 + $0x38] sm:$0xff] (!%p1115_p1), %vm408_vm1, %v1428_v9 }
  0x3c PF: > { %v1321_v10 = vld [vmem:[%s1546_s20] sm:$0xff]   ;;  %v1322_v11 = vld [vmem:[%s1546_s20 + $0x8] sm:$0xff]   ;;  %v1323_v12 = vld [vmem:[%s1546_s20 + $0x10] sm:$0xff]   ;;  %p603_p2 = scmp.eq.s32.totalorder %s1409_s26, 1  ;;  %vm594_vm2 = vcmask 130048   ;;  %p1128_p3 = scmp.ne.s32.totalorder %s1409_s26, 1 }
  0x3d   : > { %1172 = vmatprep.subr.bf16.mxu0 %v1321_v10  ;;  %1233 = vmatprep.subr.bf16.mxu1 %v1321_v10  ;;  %v1324_v13 = vld [vmem:[%s1546_s20 + $0x18] sm:$0xff]   ;;  %v1329_v14 = vld [vmem:[%s1553_s11] sm:$0xff]   ;;  %v1327_v18 = vld [vmem:[%s1546_s20 + $0x30] sm:$0xff]   ;;  %v1429_v51 = vmov (!%p1128_p3), 0   ;;  %v1430_v2 = vmov (!%p1128_p3), 1   ;;  %vm817_vm3 = vcmask (!%p1128_p3), 261120  }
  0x3e   : > { %1173 = vmatpush3.bf16.msra.mxu0 %v1321_v10  ;;  %1241 = vmatpush3.bf16.msra.mxu1 %v1321_v10  ;;  %v1330_v15 = vld [vmem:[%s1553_s11 + $0x10] sm:$0xff]   ;;  %v1325_v16 = vld [vmem:[%s1546_s20 + $0x20] sm:$0xff]   ;;  %v1326_v17 = vld [vmem:[%s1546_s20 + $0x28] sm:$0xff]   ;;  %vm841_vm4 = vcmask (!%p1128_p3), 253952  }
  0x3f   : > { %1174 = vmatprep.subr.bf16.mxu0 %v1322_v11  ;;  %1234 = vmatprep.subr.bf16.mxu1 %v1322_v11  ;;  %v1328_v19 = vld [vmem:[%s1546_s20 + $0x38] sm:$0xff]   ;;  %v1331_v20 = vld [vmem:[%s1553_s11 + $0x8] sm:$0xff]   ;;  %v417_v24 = vld [vmem:[#allocation2] sm:$0xff] }
  0x40   : > { %1188 = vmatprep.mubr.bf16.mxu0 %v1329_v14  ;;  %1192 = vmatprep.mubr.bf16.mxu1 %v1330_v15  ;;  %v1332_v21 = vld [vmem:[%s1553_s11 + $0x18] sm:$0xff]   ;;  %v419_v22 = vld [vmem:[#allocation2 + $0x10] sm:$0xff]  ;;  %v418_v34 = vld [vmem:[#allocation2 + $0x8] sm:$0xff] }
  0x41   : > { %v423_v23 = vld [vmem:[#allocation2 + $0x30] sm:$0xff]  ;;  %v421_v25 = vld [vmem:[#allocation2 + $0x20] sm:$0xff]  ;;  %v420_v28 = vld [vmem:[#allocation2 + $0x18] sm:$0xff]  ;;  %1334 = vset.pattern.permute.xlu1 (!%p1128_p3), %v1429_v51  ;;  %1333 = vset.pattern.permute.xlu0 (!%p1128_p3), %v1429_v51 }
  0x42   : > { %1175 = vmatpush3.bf16.msra.mxu0 %v1322_v11  ;;  %1242 = vmatpush3.bf16.msra.mxu1 %v1322_v11  ;;  %v424_v29 = vld [vmem:[#allocation2 + $0x38] sm:$0xff]  ;;  %v422_v35 = vld [vmem:[#allocation2 + $0x28] sm:$0xff]  ;;  %v615_v46 = vld [vmem:[%s1697_s2] sm:$0xff] (!%p1128_p3) }
  0x43   : > { %1176 = vmatprep.subr.bf16.mxu0 %v1323_v12  ;;  %1235 = vmatprep.subr.bf16.mxu1 %v1323_v12  ;;  %v616_v47 = vld [vmem:[%s1697_s2 + $0x8] sm:$0xff] (!%p1128_p3)  ;;  %v763_v52 = vld [vmem:[%s1551_s24 + $0x10] sm:$0xff] (!%p1128_p3)  ;;  %v761_v53 = vld [vmem:[%s1551_s24] sm:$0xff] (!%p1128_p3) }
  0x44   : > { %v1223_v49 = vpack.c.bf16 (!%p1128_p3), %v616_v47, %v615_v46  ;;  %781 = vperm.xlu1 (!%p1128_p3), %1334, %v763_v52   ;;  %771 = vperm.xlu0 (!%p1128_p3), %1333, %v761_v53   ;;  %v764_v58 = vld [vmem:[%s1551_s24 + $0x18] sm:$0xff] (!%p1128_p3)  ;;  %v762_v59 = vld [vmem:[%s1551_s24 + $0x8] sm:$0xff] (!%p1128_p3)  ;;  %v765_v63 = vld [vmem:[%s1551_s24 + $0x20] sm:$0xff] (!%p1128_p3) }
  0x45   : > { %v766_v62 = vld [vmem:[%s1551_s24 + $0x28] sm:$0xff] (!%p1128_p3)  ;;  %v768_v0 = vld [vmem:[%s1551_s24 + $0x38] sm:$0xff] (!%p1128_p3)  ;;  %v767_v1 = vld [vmem:[%s1551_s24 + $0x30] sm:$0xff] (!%p1128_p3) }
  0x46   : > { %1177 = vmatpush3.bf16.msra.mxu0 %v1323_v12  ;;  %1243 = vmatpush3.bf16.msra.mxu1 %v1323_v12  ;;  %v1129_v15 = vld [vmem:[%s1698_s3] ss:$0 sm:$0xff] (!%p1128_p3) }
  0x47   : > { %1178 = vmatprep.subr.bf16.mxu0 %v1324_v13  ;;  %1236 = vmatprep.subr.bf16.mxu1 %v1324_v13 }
  0x48   : > { %786 = vperm.xlu1 (!%p1128_p3), %1334, %v764_v58   ;;  %776 = vperm.xlu0 (!%p1128_p3), %1333, %v762_v59  }
  0x4a   : > { %1179 = vmatpush3.bf16.msra.mxu0 %v1324_v13  ;;  %1244 = vmatpush3.bf16.msra.mxu1 %v1324_v13 }
  0x4b   : > { %1180 = vmatprep.subr.bf16.mxu0 %v1325_v16  ;;  %1237 = vmatprep.subr.bf16.mxu1 %v1325_v16 }
  0x4c   : > { %796 = vperm.xlu1 (!%p1128_p3), %1334, %v766_v62   ;;  %791 = vperm.xlu0 (!%p1128_p3), %1333, %v765_v63  }
  0x4e   : > { %1181 = vmatpush3.bf16.msra.mxu0 %v1325_v16  ;;  %1245 = vmatpush3.bf16.msra.mxu1 %v1325_v16 }
  0x4f   : > { %1182 = vmatprep.subr.bf16.mxu0 %v1326_v17  ;;  %1238 = vmatprep.subr.bf16.mxu1 %v1326_v17 }
  0x50   : > { %806 = vperm.xlu1 (!%p1128_p3), %1334, %v768_v0   ;;  %801 = vperm.xlu0 (!%p1128_p3), %1333, %v767_v1  }
  0x52   : > { %1183 = vmatpush3.bf16.msra.mxu0 %v1326_v17  ;;  %1246 = vmatpush3.bf16.msra.mxu1 %v1326_v17 }
  0x53   : > { %1184 = vmatprep.subr.bf16.mxu0 %v1327_v18  ;;  %1239 = vmatprep.subr.bf16.mxu1 %v1327_v18 }
  0x54   : > { %1336 = vset.pattern.permute.xlu1 (!%p1128_p3), %v1430_v2  ;;  %1335 = vset.pattern.permute.xlu0 (!%p1128_p3), %v1430_v2 }
  0x55   : > { %848 = vperm.xlu1 (!%p1128_p3), %1336, %v762_v59   ;;  %844 = vperm.xlu0 (!%p1128_p3), %1335, %v761_v53  }
  0x56   : > { %1185 = vmatpush3.bf16.msra.mxu0 %v1327_v18  ;;  %1247 = vmatpush3.bf16.msra.mxu1 %v1327_v18 }
  0x57   : > { %1186 = vmatprep.subr.bf16.mxu0 %v1328_v19  ;;  %1240 = vmatprep.subr.bf16.mxu1 %v1328_v19 }
  0x59   : > { %852 = vperm.xlu1 (!%p1128_p3), %1336, %v763_v52   ;;  %856 = vperm.xlu0 (!%p1128_p3), %1335, %v764_v58  }
  0x5a   : > { %1187 = vmatpush3.bf16.msra.mxu0 %v1328_v19  ;;  %1248 = vmatpush3.bf16.msra.mxu1 %v1328_v19 }
  0x5b   : > { %1224 = vmatprep.subr.bf16.mxu0 (!%p1128_p3), %v1223_v49  ;;  %1249 = vmatprep.subr.bf16.mxu1 (!%p1128_p3), %v1223_v49 }
  0x5d   : > { %1189 = vmatmul.mubr.bf16.vlgmr.msra.gmra.mrb[0].mxu0 %v1331_v20  ;;  %1193 = vmatmul.mubr.bf16.vlgmr.msra.gmra.mrb[0].mxu1 %v1332_v21 }
  0x5e   : > { %1226 = vmatpush3.bf16.msra.mxu0 (!%p1128_p3), %v1223_v49  ;;  %1250 = vmatpush3.bf16.msra.mxu1 (!%p1128_p3), %v1223_v49 }
  0x5f   : > { %860 = vperm.xlu1 (!%p1128_p3), %1336, %v765_v63   ;;  %864 = vperm.xlu0 (!%p1128_p3), %1335, %v766_v62  }
  0x63   : > { %868 = vperm.xlu1 (!%p1128_p3), %1336, %v767_v1   ;;  %872 = vperm.xlu0 (!%p1128_p3), %1335, %v768_v0  }
  0xc3   : > { %v1600_v3 = vpop.permute.xlu1 (!%p1128_p3), %781  ;;  %v772_v4 = vpop.permute.xlu0 (!%p1128_p3), %771 }
  0xc7   : > { %v787_v5 = vpop.permute.xlu1 (!%p1128_p3), %786  ;;  %v777_v6 = vpop.permute.xlu0 (!%p1128_p3), %776 }
  0xcb   : > { %v797_v7 = vpop.permute.xlu1 (!%p1128_p3), %796  ;;  %v792_v8 = vpop.permute.xlu0 (!%p1128_p3), %791 }
  0xcf   : > { %v807_v9 = vpop.permute.xlu1 (!%p1128_p3), %806  ;;  %v1602_v10 = vpop.permute.xlu0 (!%p1128_p3), %801 }
  0xd4   : > { %v849_v11 = vpop.permute.xlu1 (!%p1128_p3), %848  ;;  %v845_v12 = vpop.permute.xlu0 (!%p1128_p3), %844 }
  0xd8   : > { %v853_v13 = vpop.permute.xlu1 (!%p1128_p3), %852  ;;  %v857_v14 = vpop.permute.xlu0 (!%p1128_p3), %856 }
 0x130   : > { %v1190_v26 = vpop.f32.mrb[0].mxu0  ;;  %v1194_v27 = vpop.f32.mrb[0].mxu1  ;;  %606 = sbr.rel (%p1128_p3) target bundleno = 568 (0x238), region = 101 }
 0x131   : > { %v588_v30 = vadd.f32 %v1190_v26, %v419_v22  ;;  %v592_v31 = vadd.f32 %v1194_v27, %v423_v23  ;;  %v555_v32 = vpop.f32.mrb[1].mxu0  ;;  %v571_v33 = vpop.f32.mrb[1].mxu1 }
 0x132   : > { %v586_v36 = vadd.f32 %v555_v32, %v417_v24  ;;  %v590_v37 = vadd.f32 %v571_v33, %v421_v25  ;;  %v1191_v38 = vpop.f32.mrb[2].mxu0  ;;  %v1195_v39 = vpop.f32.mrb[2].mxu1 }
 0x133   : > { %597 = vst.msk [vmem:[#allocation2 + $0x10] sm:$0xff] %vm594_vm2, %v588_v30  ;;  %601 = vst.msk [vmem:[#allocation2 + $0x30] sm:$0xff] %vm594_vm2, %v592_v31  ;;  %v589_v40 = vadd.f32 %v1191_v38, %v420_v28  ;;  %v593_v41 = vadd.f32 %v1195_v39, %v424_v29  ;;  %v558_v42 = vpop.f32.mrb[3].mxu0  ;;  %v574_v43 = vpop.f32.mrb[3].mxu1 }
 0x134   : > { %595 = vst.msk [vmem:[#allocation2] sm:$0xff] %vm594_vm2, %v586_v36  ;;  %599 = vst.msk [vmem:[#allocation2 + $0x20] sm:$0xff] %vm594_vm2, %v590_v37  ;;  %v587_v44 = vadd.f32 %v558_v42, %v418_v34  ;;  %v591_v45 = vadd.f32 %v574_v43, %v422_v35  ;;  %v861_v24 = vpop.permute.xlu1 (!%p1128_p3), %860  ;;  %v865_v25 = vpop.permute.xlu0 (!%p1128_p3), %864 }
 0x135   : > { %598 = vst.msk [vmem:[#allocation2 + $0x18] sm:$0xff] %vm594_vm2, %v589_v40  ;;  %602 = vst.msk [vmem:[#allocation2 + $0x38] sm:$0xff] %vm594_vm2, %v593_v41 }
 0x136   : > { %596 = vst.msk [vmem:[#allocation2 + $0x8] sm:$0xff] %vm594_vm2, %v587_v44  ;;  %600 = vst.msk [vmem:[#allocation2 + $0x28] sm:$0xff] %vm594_vm2, %v591_v45 }
 0x138   : > { %v869_v1 = vpop.permute.xlu1 %868 }
 0x13a   : > { %v609_v56 = vld [vmem:[#allocation2 + $0x10] sm:$0xff] }
 0x13b   : > { %v607_v48 = vld [vmem:[#allocation2] sm:$0xff]  ;;  %v613_v57 = vld [vmem:[#allocation2 + $0x30] sm:$0xff] }
 0x13c   : > { %1200 = vmatprep.mubr.msk.f32.mxu0 %vm594_vm2, %v607_v48  ;;  %v611_v50 = vld [vmem:[#allocation2 + $0x20] sm:$0xff]  ;;  %v610_v60 = vld [vmem:[#allocation2 + $0x18] sm:$0xff] }
 0x13d   : > { %1206 = vmatprep.mubr.msk.f32.mxu1 %vm594_vm2, %v611_v50  ;;  %v608_v54 = vld [vmem:[#allocation2 + $0x8] sm:$0xff]  ;;  %v614_v61 = vld [vmem:[#allocation2 + $0x38] sm:$0xff] }
 0x13e   : > { %v612_v55 = vld [vmem:[#allocation2 + $0x28] sm:$0xff]  ;;  %1201 = vmatmul.mubr.msk.f32.vlgmr.msra.gmra.mrb[0].mxu0 %vm594_vm2, %v608_v54 }
 0x13f   : > { %1207 = vmatmul.mubr.msk.f32.vlgmr.msra.gmra.mrb[0].mxu1 %vm594_vm2, %v612_v55  ;;  %1203 = vmatprep.mubr.msk.f32.mxu0 %vm594_vm2, %v609_v56 }
 0x140   : > { %1209 = vmatprep.mubr.msk.f32.mxu1 %vm594_vm2, %v613_v57 }
 0x142   : > { %1204 = vmatmul.mubr.msk.f32.gmra.mrb[2].mxu0 %vm594_vm2, %v610_v60  ;;  %v873_v60 = vpop.permute.xlu0 %872 }
 0x143   : > { %1210 = vmatmul.mubr.msk.f32.gmra.mrb[2].mxu1 %vm594_vm2, %v614_v61 }
 0x211   : > { %v1202_v16 = vpop.f32.mrb[0].mxu0 }
 0x212   : > { %v1208_v17 = vpop.f32.mrb[0].mxu1  ;;  %v720_v18 = vadd.f32 %v1202_v16, %v1129_v15  ;;  %v714_v20 = vpop.f32.mrb[1].mxu0 }
 0x213   : > { %v740_v19 = vadd.f32 %v1208_v17, %v1129_v15  ;;  %v734_v21 = vpop.f32.mrb[1].mxu1  ;;  %v715_v22 = vadd.f32 %v1129_v15, %v714_v20 }
 0x214   : > { %v735_v23 = vadd.f32 %v1129_v15, %v734_v21  ;;  %v754_v26 = vmax.f32 %v720_v18, 0.0 }
 0x215   : > { %v758_v27 = vmax.f32 %v740_v19, 0.0  ;;  %v753_v28 = vmax.f32 %v715_v22, 0.0  ;;  %v1205_v30 = vpop.f32.mrb[2].mxu0 }
 0x216   : > { %v757_v29 = vmax.f32 %v735_v23, 0.0  ;;  %v1211_v31 = vpop.f32.mrb[2].mxu1  ;;  %v810_v32 = vadd.f32 %v777_v6, %v754_v26  ;;  %v876_v33 = vadd.f32 %v849_v11, %v754_v26  ;;  %v724_v36 = vpop.f32.mrb[3].mxu0  ;;  %v730_v52 = vadd.f32 %v1205_v30, %v1129_v15 }
 0x217   : > { %v814_v34 = vadd.f32 %v797_v7, %v758_v27  ;;  %v880_v35 = vadd.f32 %v865_v25, %v758_v27  ;;  %v744_v37 = vpop.f32.mrb[3].mxu1  ;;  %v809_v38 = vadd.f32 %v772_v4, %v753_v28  ;;  %v875_v39 = vadd.f32 %v845_v12, %v753_v28 }
 0x218   : > { %v813_v40 = vadd.f32 %v792_v8, %v757_v29  ;;  %v879_v41 = vadd.f32 %v861_v24, %v757_v29  ;;  %v819_v42 = vsel %vm817_vm3, %v810_v32, -inf  ;;  %v884_v43 = vsel %vm817_vm3, %v876_v33, -inf }
 0x219   : > { %v824_v44 = vsel %vm817_vm3, %v814_v34, -inf  ;;  %v889_v45 = vsel %vm817_vm3, %v880_v35, -inf  ;;  %v818_v48 = vsel %vm817_vm3, %v809_v38, -inf  ;;  %v883_v49 = vsel %vm817_vm3, %v875_v39, -inf }
 0x21a   : > { %v825_v46 = vmax.f32 %v819_v42, %v824_v44  ;;  %v890_v47 = vmax.f32 %v884_v43, %v889_v45  ;;  %v822_v50 = vsel %vm817_vm3, %v813_v40, -inf  ;;  %v887_v51 = vsel %vm817_vm3, %v879_v41, -inf }
 0x21b   : > { %v750_v53 = vadd.f32 %v1211_v31, %v1129_v15  ;;  %v823_v54 = vmax.f32 %v818_v48, %v822_v50  ;;  %v888_v55 = vmax.f32 %v883_v49, %v887_v51  ;;  %v725_v56 = vadd.f32 %v1129_v15, %v724_v36  ;;  %v839_v36 = vld [vmem:[#allocation3] sm:$0x1] }
 0x21c   : > { %v745_v57 = vadd.f32 %v1129_v15, %v744_v37  ;;  %v756_v58 = vmax.f32 %v730_v52, 0.0  ;;  %v904_v37 = vld [vmem:[#allocation3 + $0x1] sm:$0x1] }
 0x21d   : > { %v760_v59 = vmax.f32 %v750_v53, 0.0  ;;  %v830_v61 = vmax.f32 %v823_v54, %v825_v46  ;;  %v895_v62 = vmax.f32 %v888_v55, %v890_v47  ;;  %v755_v63 = vmax.f32 %v725_v56, 0.0 }
 0x21e   : > { %v759_v0 = vmax.f32 %v745_v57, 0.0  ;;  %v812_v2 = vadd.f32 %v787_v5, %v756_v58  ;;  %v878_v4 = vadd.f32 %v857_v14, %v756_v58 }
 0x21f   : > { %v816_v6 = vadd.f32 %v807_v9, %v760_v59  ;;  %v882_v7 = vadd.f32 %v873_v60, %v760_v59  ;;  %v811_v8 = vadd.f32 %v1600_v3, %v755_v63  ;;  %v877_v11 = vadd.f32 %v853_v13, %v755_v63 }
 0x220   : > { %v815_v12 = vadd.f32 %v1602_v10, %v759_v0  ;;  %v881_v16 = vadd.f32 %v869_v1, %v759_v0  ;;  %v821_v15 = vsel %vm817_vm3, %v812_v2, -inf  ;;  %v886_v17 = vsel %vm817_vm3, %v878_v4, -inf }
 0x221   : > { %v828_v18 = vsel %vm817_vm3, %v816_v6, -inf  ;;  %v893_v19 = vsel %vm817_vm3, %v882_v7, -inf  ;;  %v820_v5 = vsel %vm817_vm3, %v811_v8, -inf  ;;  %v885_v9 = vsel %vm817_vm3, %v877_v11, -inf }
 0x222   : > { %v829_v20 = vmax.f32 %v821_v15, %v828_v18  ;;  %v894_v21 = vmax.f32 %v886_v17, %v893_v19  ;;  %v826_v3 = vsel %vm817_vm3, %v815_v12, -inf  ;;  %v891_v13 = vsel %vm817_vm3, %v881_v16, -inf }
 0x223   : > { %v827_v10 = vmax.f32 %v820_v5, %v826_v3  ;;  %v892_v14 = vmax.f32 %v885_v9, %v891_v13 }
 0x225   : > { %v831_v22 = vmax.f32 %v827_v10, %v829_v20  ;;  %v896_v23 = vmax.f32 %v892_v14, %v894_v21 }
 0x227   : > { %v832_v24 = vmax.f32 %v830_v61, %v831_v22  ;;  %v897_v25 = vmax.f32 %v895_v62, %v896_v23 }
 0x229   : > { %v833_v26 = vrot.slane %v832_v24, 4  ;;  %v898_v27 = vrot.slane %v897_v25, 4 }
 0x22b   : > { %v834_v28 = vmax.f32 %v832_v24, %v833_v26  ;;  %v899_v29 = vmax.f32 %v897_v25, %v898_v27 }
 0x22d   : > { %v835_v30 = vrot.slane %v834_v28, 2  ;;  %v900_v31 = vrot.slane %v899_v29, 2 }
 0x22f   : > { %v836_v32 = vmax.f32 %v834_v28, %v835_v30  ;;  %v901_v33 = vmax.f32 %v899_v29, %v900_v31 }
 0x231   : > { %v837_v34 = vrot.slane %v836_v32, 1  ;;  %v902_v35 = vrot.slane %v901_v33, 1 }
 0x233   : > { %v838_v38 = vmax.f32 %v836_v32, %v837_v34  ;;  %v903_v39 = vmax.f32 %v901_v33, %v902_v35 }
 0x235   : > { %v840_v40 = vmax.f32 %v839_v36, %v838_v38  ;;  %v905_v41 = vmax.f32 %v904_v37, %v903_v39 }
 0x237   : > { %842 = vst.msk [vmem:[#allocation3] sm:$0x1] %vm841_vm4, %v840_v40  ;;  %906 = vst.msk [vmem:[#allocation3 + $0x1] sm:$0x1] %vm841_vm4, %v905_v41 }
 0x238 PF: > { %p907_p4 = scmp.eq.s32.totalorder %s1413_s27, 3 }
 0x23a   : > { %p908_p5 = pnand %p907_p4, %p603_p2 }
 0x23b   : > { %v913_v42 = vld [vmem:[%s1700_s5] sm:$0xff] (!%p908_p5)  ;;  %v914_v43 = vld [vmem:[%s1700_s5 + $0x8] sm:$0xff] (!%p908_p5)  ;;  %v915_v44 = vld [vmem:[%s1700_s5 + $0x10] sm:$0xff] (!%p908_p5)  ;;  %v1431_v45 = vmov (!%p908_p5), 0.0|0.0   ;;  %vm1432_vm5 = vmmov (!%p908_p5), 0   ;;  %v1433_v48 = vmov (!%p908_p5), 0.0  }
 0x23c   : > { %911 = sbr.rel (%p908_p5) target bundleno = 1112 (0x458), region = 105  ;;  %1227 = vmatprep.subr.bf16.mxu0 (!%p908_p5), %v1431_v45  ;;  %v1228_v46 = vpack.c.bf16 (!%p908_p5), %v914_v43, %v913_v42  ;;  %v916_v47 = vld [vmem:[%s1700_s5 + $0x18] sm:$0xff] (!%p908_p5)  ;;  %1220 = vmatprep.mubr.msk.f32.mxu0 (!%p908_p5), %vm1432_vm5, %v1433_v48  ;;  %vm924_vm6 = vcmask (!%p908_p5), 261120   ;;  %v1138_v51 = vld [vmem:[%s1701_s6] ss:$0 sm:$0xff] (!%p908_p5)  ;;  %vm998_vm7 = vcmask (!%p908_p5), 9216  }
 0x23d   : > { %v1231_v49 = vpack.c.bf16 (!%p908_p5), %v916_v47, %v915_v44 }
 0x23e   : > { %1229 = vmatpush3.bf16.msra.mxu0 (!%p908_p5), %v1228_v46  ;;  %v912_v50 = vld [vmem:[#allocation3] sm:$0x3] (!%p908_p5) }
 0x23f   : > { %1230 = vmatprep.subr.bf16.mxu0 (!%p908_p5), %v1431_v45 }
 0x242   : > { %1232 = vmatpush3.bf16.msra.mxu0 (!%p908_p5), %v1231_v49 }
 0x245   : > { %1221 = vmatmul.mubr.msk.f32.vlgmr.msra.gmra.mrb[0].mxu0 %vm924_vm6, %v912_v50 }
 0x318   : > { %v994_v52 = vpop.f32.mrb[0].mxu0 }
 0x319   : > { %v995_v53 = vadd.f32 %v1138_v51, %v994_v52  ;;  %v1222_v54 = vpop.f32.mrb[1].mxu0 }
 0x31b   : > { %v999_v55 = vsel %vm998_vm7, %v995_v53, -inf }
 0x31c   : > { %1000 = vmax.xlane.f32.xlu0 %v999_v55 }
 0x3a9   : > { %v1001_v56 = vpop.xlane.xlu0 %1000 }
 0x3aa   : > { %v1002_v57 = vsub.f32 %v995_v53, %v1001_v56 }
 0x3ac   : > { %v1003_v58 = vmul.f32 1.442695, %v1002_v57 }
 0x3ae   : > { %1337 = vpow2.f32 %v1003_v58 }
 0x3b8   : > { %v1338_v59 = vpop.eup %1337 }
 0x3b9   : > { %v1005_v60 = vsel %vm998_vm7, %v1338_v59, 0.0 }
 0x3ba   : > { %1006 = vadd.xlane.f32.xlu0 %v1005_v60 }
 0x447   : > { %v1007_v61 = vpop.xlane.xlu0 %1006 }
 0x448   : > { %1339 = vlog2.f32 %v1007_v61 }
 0x452   : > { %v1340_v62 = vpop.eup %1339 }
 0x453   : > { %v1009_v63 = vmul.f32 0.6931472, %v1340_v62 }
 0x455   : > { %v1010_v0 = vsub.f32 %v1002_v57, %v1009_v63 }
 0x457   : > { %1011 = vst.msk [vmem:[#allocation5] sm:$0x3] %vm998_vm7, %v1010_v0 }
 0x458 PF: > { %p1648_p6 = scmp.eq.s32.totalorder %s1102_s8, 7  ;;  %s1434_s14 = smov [#allocation5]  }
 0x459   : > { %s1019_s16 = sshll.u32 %s1434_s14, 4  ;;  %s1020_s16 = int_to_ptr.vmem [resolvable:$true] %s1019_s16 }
 0x45a   : > { %s1341_s17 = scalar_lea.vmem %s1020_s16, 32  ;;  %p1348_p10 = scmp.lt.s32.totalorder %s1020_s16, %s1020_s16 }
 0x45b   : > { %p1342_p7 = scmp.ne.s32.totalorder %s1020_s16, %s1341_s17  ;;  %p1349_p11 = scmp.lt.s32.totalorder %s1341_s17, %s1341_s17 }
 0x45d   : > { %p1343_p8 = pnand %p1342_p7, %p1648_p6  ;;  %p1350_p12 = por %p1349_p11, %p1348_p10 }
 0x45f   : > { %p1344_p9 = pneg %p1343_p8 }
 0x461   : > { %p1351_p13 = pnand %p1350_p12, %p1344_p9 }
 0x463   : > { %1354 = shalt.err (!%p1351_p13)
}
 0x464   : > { %s1355_s8 = scalar_lea.hbm %s1702_s7, 32 }
 0x465   : > { %p1356_p0 = scmp.ne.s32.totalorder %s1702_s7, %s1355_s8  ;;  %p1361_p3 = scmp.lt.u32.totalorder %s1355_s8, %s1702_s7 }
 0x467   : > { %p1357_p1 = pnand %p1356_p0, %p1648_p6 }
 0x469   : > { %p1358_p2 = pneg %p1357_p1 }
 0x46b   : > { %p1363_p4 = pnand %p1361_p3, %p1358_p2 }
 0x46d   : > { %1366 = shalt.err (!%p1363_p4)
}
 0x46e   : > { %1252 = dma.vmem_to_hbm [thread:$0]  (%p1648_p6), %s1020_s16, 32, %s1702_s7, [#allocation6]  }
 0x46f   : > { %1396 = dma.done.wait (%p1648_p6), [#allocation6], 32  }
 0x470   : > { %1398 = vsyncadd (%p1648_p6), [#allocation6], 4294967264 }
 0x471 PF: > { %s18_s30 = sadd.s32 1, %s1425_s30   ;;  %s1704_s24 = smov %s1405_s25 }
 0x472   : > { %p15_p5 = scmp.ge.s32.totalorder %s18_s30, 10   ;;  %s1705_s25 = smov %s1527_s15 }
 0x473   : > { %s1706_s26 = smov %s1417_s28  ;;  %s1707_s27 = smov %s1421_s29 }
 0x474   : > { %s1708_s28 = smov %s1711_s9  ;;  %s1709_s29 = smov %s1715_s10 }
 0x475   :  { %17 = sbr.rel (!%p15_p5) target bundleno = 4 (0x4), region = 143 }
 0x47c   :  { %1032 = vsyncpa [#allocation6], 1 }
 0x47d   :  { %1034 = vsyncpa [#allocation6 + $0x1], 1 }

</bundles_post_ra>
